<compile_context>
chip_gen: v5e
topology: v5e:2x2
jax: 0.10.0
libtpu: 0.0.40
codegen_flags: <defaults>
</compile_context>

<pallas_src>
import math
import functools
import numpy as np
import jax
import jax.numpy as jnp
from jax import lax
from jax.experimental import pallas as pl
from jax.experimental.pallas import tpu as pltpu


# --------------------------- parameter / filter setup (glue) ----------------

def _to_mel(hz):
    return 2595 * np.log10(1 + hz / 700)


def _to_hz(mel):
    return 700 * (10 ** (mel / 2595) - 1)


def get_padding_elem(L_in, stride, kernel_size, dilation):
    if stride > 1:
        padding = [math.floor(kernel_size / 2), math.floor(kernel_size / 2)]
    else:
        L_out = math.floor((L_in - dilation * (kernel_size - 1) - 1) / stride) + 1
        padding = [math.floor((L_in - L_out) / 2), math.floor((L_in - L_out) / 2)]
    return padding


def init_sinc_params(out_channels, kernel_size, sample_rate, min_low_hz, min_band_hz):
    """Deterministic init, mirrors SincConv._init_sinc_conv."""
    high_hz = sample_rate / 2 - (min_low_hz + min_band_hz)
    mel = np.linspace(_to_mel(min_low_hz), _to_mel(high_hz), out_channels + 1)
    hz = _to_hz(mel)
    low_hz_ = hz[:-1][:, None].astype(np.float32)                  # (OC, 1)
    band_hz_ = (hz[1:] - hz[:-1])[:, None].astype(np.float32)      # (OC, 1)
    n_lin = np.linspace(0.0, kernel_size / 2 - 1, num=int(kernel_size / 2))
    window_ = (0.54 - 0.46 * np.cos(2 * math.pi * n_lin / kernel_size)).astype(np.float32)
    n = (kernel_size - 1) / 2.0
    n_ = (2 * math.pi * np.arange(-n, 0.0)[None, :] / sample_rate).astype(np.float32)
    return (jnp.asarray(low_hz_), jnp.asarray(band_hz_),
            jnp.asarray(window_), jnp.asarray(n_))


def get_sinc_filters(low_hz_, band_hz_, window_, n_, out_channels, kernel_size,
                     sample_rate, min_low_hz, min_band_hz):
    """Mirrors SincConv._get_sinc_filters. Returns (out_channels, kernel_size)."""
    low = min_low_hz + jnp.abs(low_hz_)                                      # (OC, 1)
    high = jnp.clip(low + min_band_hz + jnp.abs(band_hz_),
                    min_low_hz, sample_rate / 2)                             # (OC, 1)
    band = (high - low)[:, 0]                                                # (OC,)
    f_times_t_low = low @ n_                                                 # (OC, K//2)
    f_times_t_high = high @ n_
    band_pass_left = ((jnp.sin(f_times_t_high) - jnp.sin(f_times_t_low))
                      / (n_ / 2) * window_)
    band_pass_center = 2 * band[:, None]
    band_pass_right = jnp.flip(band_pass_left, axis=1)
    band_pass = jnp.concatenate(
        [band_pass_left, band_pass_center, band_pass_right], axis=1)
    band_pass = band_pass / (2 * band[:, None])
    return band_pass.reshape(out_channels, kernel_size)


def _round_up(v, m):
    return ((v + m - 1) // m) * m


# --------------------------- Pallas kernel (hot path) ------------------------

def _sinc_conv_kernel(x_ref, h_ref, f_ref, o_ref, xcat_ref, patch_ref, *,
                      K, Kp, dilation, t_tile, hb, k_blk, precision):
    """One (batch, group, time-tile) grid step.

    x_ref    : (1, 1, 1, t_tile)      current input time tile of this group's channel
    h_ref    : (1, 1, 1, hb)          right halo (next round_up((K-1)*dil, 128) samples)
    f_ref    : (1, Kp, cpg_p)         this group's filters, (tap, out-channel) layout
    o_ref    : (1, 1, t_tile, cpg_p)  time-major output block (channels on lanes)
    xcat_ref : VMEM (1, t_tile + hb)  staged tile + halo
    patch_ref: VMEM (k_blk, t_tile)   one K-block of the im2col patch
    """
    # Stage current tile + halo contiguously once (shared by all taps/channels).
    xcat_ref[0:1, 0:t_tile] = x_ref[0, 0]
    xcat_ref[0:1, t_tile:t_tile + hb] = h_ref[0, 0]

    n_blocks = (Kp + k_blk - 1) // k_blk
    for kb in range(n_blocks):                       # static, unrolled K-block loop
        base = kb * k_blk
        kb_eff = min(k_blk, Kp - base)

        # Build the (kb_eff, t_tile) tap block 8 sublane-aligned rows at a time:
        # 8 shifted slices -> one aligned (8, t_tile) store (no masked stores).
        for g in range(kb_eff // 8):
            rows = []
            for r in range(8):
                k = base + g * 8 + r
                # Taps k >= K correspond to zero-padded filter rows; clamp the
                # offset so the (irrelevant) data read stays in bounds.
                off = min(k, K - 1) * dilation       # static Python int
                rows.append(xcat_ref[0:1, off:off + t_tile])
            patch_ref[g * 8:(g + 1) * 8, :] = jnp.concatenate(rows, axis=0)

        # (t_tile, cpg_p) += patch_blk^T @ f_blk.  The small filter matrix is the
        # MXU-stationary (weight) operand; the big patch streams as LHS rows.
        part = lax.dot_general(
            patch_ref[0:kb_eff, :],
            f_ref[0, base:base + kb_eff, :],
            dimension_numbers=(((0,), (0,)), ((), ())),
            preferred_element_type=jnp.float32,
            precision=precision)

        if kb == 0:
            o_ref[0, 0, :, :] = part
        else:
            o_ref[0, 0, :, :] = o_ref[0, 0, :, :] + part


# --------------------------- forward wrapper --------------------------------

def sinc_conv_forward(x, *, out_channels, kernel_size, in_channels,
                      stride=1, dilation=1, padding='same',
                      sample_rate=16000, min_low_hz=50, min_band_hz=50,
                      params=None, time_tile=2048, precision=None):
    assert kernel_size % 2 == 1, "kernel size must be odd"
    assert out_channels % in_channels == 0
    cpg = out_channels // in_channels

    if params is None:
        params = init_sinc_params(out_channels, kernel_size, sample_rate,
                                  min_low_hz, min_band_hz)
    low_hz_, band_hz_, window_, n_ = params
    filters = get_sinc_filters(low_hz_, band_hz_, window_, n_, out_channels,
                               kernel_size, sample_rate, min_low_hz, min_band_hz)

    # x.transpose(1, -1)  (+ unsqueeze for 2-D inputs), as in the torch module.
    unsqueeze = x.ndim == 2
    xc = x[:, None, :] if unsqueeze else jnp.transpose(x, (0, 2, 1))
    xc = xc.astype(jnp.float32)
    B, IC, T_in = xc.shape
    assert IC == in_channels

    if padding == 'same':
        # NOTE: torch module passes self.in_channels as L_in here (SpeechBrain
        # quirk); for stride==1 the result is still a length-preserving pad.
        pad_l, pad_r = get_padding_elem(in_channels, stride, kernel_size, dilation)
        assert max(pad_l, pad_r) < T_in, "reflect padding larger than input length"
        xc = jnp.pad(xc, ((0, 0), (0, 0), (pad_l, pad_r)), mode='reflect')
    elif padding == 'causal':
        num_pad = (kernel_size - 1) * dilation
        xc = jnp.pad(xc, ((0, 0), (0, 0), (num_pad, 0)))
    elif padding == 'valid':
        pass
    else:
        raise ValueError(padding)

    T_pad = xc.shape[-1]
    halo = dilation * (kernel_size - 1)
    T_out1 = T_pad - halo                       # stride-1 output length
    assert T_out1 > 0, "input shorter than receptive field"

    # --- tiling parameters --------------------------------------------------
    hb = max(_round_up(halo, 128), 128)                    # narrow halo block
    t_tile = _round_up(max(int(time_tile), 128), hb)       # multiple of hb (and 128)
    t_tile = min(t_tile, _round_up(T_out1, hb))            # don't over-pad tiny inputs
    nt = (T_out1 + t_tile - 1) // t_tile
    T_out_pad = nt * t_tile                                 # lane-dense time extent
    T_in_pad = T_out_pad + hb                               # last tile's halo in-bounds

    Kp = _round_up(kernel_size, 8)                          # 8-aligned tap count
    k_blk = min(128, Kp)                                    # K-block size
    cpg_p = _round_up(cpg, 128)                             # lane-dense channels

    xc = jnp.pad(xc, ((0, 0), (0, 0), (0, T_in_pad - T_pad)))
    x4 = xc.reshape(B, IC, 1, T_in_pad)

    # Filters in (group, tap, out-channel) layout, zero-padded to (IC, Kp, cpg_p).
    filt = filters.reshape(IC, cpg, kernel_size).astype(jnp.float32)
    filt_t = jnp.transpose(filt, (0, 2, 1))                  # (IC, K, cpg)
    filt_p = jnp.zeros((IC, Kp, cpg_p), jnp.float32)
    filt_p = filt_p.at[:, :kernel_size, :cpg].set(filt_t)

    halo_blocks = t_tile // hb                               # integral by construction

    kernel = functools.partial(_sinc_conv_kernel, K=kernel_size, Kp=Kp,
                               dilation=dilation, t_tile=t_tile, hb=hb,
                               k_blk=k_blk, precision=precision)

    # Size the scoped VMEM limit from actual usage (double-buffered blocks +
    # scratch + dot temporaries), with margin; stays well within v7x's 64 MiB.
    vmem_bytes = 4 * (2 * (t_tile + hb + Kp * cpg_p + t_tile * cpg_p)
                      + (t_tile + hb) + k_blk * t_tile
                      + 3 * t_tile * cpg_p + 2 * k_blk * t_tile)
    vmem_limit = int(min(max(4 * vmem_bytes, 32 * 1024 * 1024), 48 * 1024 * 1024))

    out4 = pl.pallas_call(
        kernel,
        out_shape=jax.ShapeDtypeStruct((B, IC, T_out_pad, cpg_p), jnp.float32),
        grid_spec=pltpu.PrefetchScalarGridSpec(
            num_scalar_prefetch=0,
            grid=(B, IC, nt),
            in_specs=[
                # current time tile of this (batch, group) channel
                pl.BlockSpec((1, 1, 1, t_tile), lambda b, c, t: (b, c, 0, t)),
                # narrow right-halo block (next round_up(halo,128) samples)
                pl.BlockSpec((1, 1, 1, hb),
                             lambda b, c, t: (b, c, 0, (t + 1) * halo_blocks)),
                # this group's filters (tap-major, channel-lane layout)
                pl.BlockSpec((1, Kp, cpg_p), lambda b, c, t: (c, 0, 0)),
            ],
            out_specs=pl.BlockSpec((1, 1, t_tile, cpg_p),
                                   lambda b, c, t: (b, c, t, 0)),
            scratch_shapes=[
                pltpu.VMEM((1, t_tile + hb), jnp.float32),    # staged tile + halo
                pltpu.VMEM((k_blk, t_tile), jnp.float32),     # one K-block of im2col
            ],
        ),
        compiler_params=pltpu.CompilerParams(
            dimension_semantics=("parallel", "parallel", "parallel"),
            vmem_limit_bytes=vmem_limit),
    )(x4, x4, filt_p)

    # --- epilogue (views / small copies only) --------------------------------
    y = out4[:, :, :T_out1, :cpg]                 # drop time + channel padding
    if stride > 1:
        # TODO(synk): fold stride into the kernel patch build (strided slices)
        # so only the decimated positions are computed and written.
        y = y[:, :, ::stride, :]
    if IC == 1:
        y = y[:, 0]                               # (B, T_out, OC): no transpose needed
    else:
        T_dec = y.shape[2]
        y = jnp.transpose(y, (0, 2, 1, 3)).reshape(B, T_dec, IC * cpg)
    if unsqueeze and out_channels == 1:           # wx.squeeze(1) in torch
        return y[:, :, 0]                         # (B, T_out)
    return y                                      # (B, T_out, OC)


# --------------------------- plain-JAX reference -----------------------------

def sinc_conv_reference(x, *, out_channels, kernel_size, in_channels,
                        stride=1, dilation=1, padding='same',
                        sample_rate=16000, min_low_hz=50, min_band_hz=50,
                        params=None):
    if params is None:
        params = init_sinc_params(out_channels, kernel_size, sample_rate,
                                  min_low_hz, min_band_hz)
    low_hz_, band_hz_, window_, n_ = params
    filters = get_sinc_filters(low_hz_, band_hz_, window_, n_, out_channels,
                               kernel_size, sample_rate, min_low_hz, min_band_hz)
    unsqueeze = x.ndim == 2
    xc = x[:, None, :] if unsqueeze else jnp.transpose(x, (0, 2, 1))
    xc = xc.astype(jnp.float32)
    if padding == 'same':
        pad_l, pad_r = get_padding_elem(in_channels, stride, kernel_size, dilation)
        xc = jnp.pad(xc, ((0, 0), (0, 0), (pad_l, pad_r)), mode='reflect')
    elif padding == 'causal':
        xc = jnp.pad(xc, ((0, 0), (0, 0), ((kernel_size - 1) * dilation, 0)))
    w = filters.reshape(out_channels, 1, kernel_size).astype(jnp.float32)
    y = lax.conv_general_dilated(
        xc, w, window_strides=(stride,), padding='VALID',
        rhs_dilation=(dilation,), dimension_numbers=('NCH', 'OIH', 'NCH'),
        feature_group_count=in_channels, precision=lax.Precision.HIGHEST)
    if unsqueeze and y.shape[1] == 1:
        return y[:, 0, :]
    return jnp.transpose(y, (0, 2, 1))


# --------------------------- demo -------------------------------------------

if __name__ == "__main__":
    key = jax.random.PRNGKey(0)

    configs = [
        # name,            shape,        IC,  OC,  K,   stride, dil, padding
        ("3d_same",        (2, 256, 2),   2,   8,  11,  1,      1,  'same'),
        ("2d_same",        (2, 200),      1,  16,  11,  1,      1,  'same'),
        ("2d_causal_s2d2", (2, 250),      1,   8,   9,  2,      2,  'causal'),
        ("sincnet_like",   (1, 512),      1, 128, 101,  1,      1,  'same'),
    ]

    for i, (name, shape, ic, oc, ks, st, dil, pad) in enumerate(configs):
        xkey = jax.random.fold_in(key, i)
        x = jax.random.normal(xkey, shape, dtype=jnp.float32)
        params = init_sinc_params(oc, ks, sample_rate=16000,
                                  min_low_hz=50, min_band_hz=50)
        kwargs = dict(out_channels=oc, kernel_size=ks, in_channels=ic,
                      stride=st, dilation=dil, padding=pad, params=params)

        out = jax.block_until_ready(sinc_conv_forward(x, **kwargs))
        ref = jax.block_until_ready(sinc_conv_reference(x, **kwargs))

        assert out.shape == ref.shape, (name, out.shape, ref.shape)
        # Kernel uses default MXU precision (per review: HIGHEST dropped); the
        # reference is f32-HIGHEST, so allow bf16-pass-level tolerances.
        np.testing.assert_allclose(np.asarray(out), np.asarray(ref),
                                   rtol=3e-2, atol=3e-2, err_msg=name)

    print("KERNEL_OK")
</pallas_src>

<mosaic_0001>
module attributes {stable_mosaic.version = 11 : i64} {
  func.func @_sinc_conv_kernel(%arg0: i32, %arg1: i32, %arg2: i32, %arg3: memref<1x1x1x256xf32, #tpu.memory_space<vmem>>, %arg4: memref<1x1x1x128xf32, #tpu.memory_space<vmem>>, %arg5: memref<1x16x128xf32, #tpu.memory_space<vmem>>, %arg6: memref<1x1x256x128xf32, #tpu.memory_space<vmem>>, %arg7: memref<1x384xf32, #tpu.memory_space<vmem>>, %arg8: memref<16x256xf32, #tpu.memory_space<vmem>>) attributes {dimension_semantics = [#tpu.dimension_semantics<parallel>, #tpu.dimension_semantics<parallel>, #tpu.dimension_semantics<parallel>], iteration_bounds = array<i64: 2, 2, 1>, scalar_prefetch = 0 : i64, scratch_operands = 2 : i64, tpu.core_type = #tpu.core_type<tc>, window_params = [{transform_indices = @transform_0, window_bounds = array<i64: 1, 1, 1, 256>}, {transform_indices = @transform_1, window_bounds = array<i64: 1, 1, 1, 128>}, {transform_indices = @transform_2, window_bounds = array<i64: 1, 16, 128>}, {transform_indices = @transform_3, window_bounds = array<i64: 1, 1, 256, 128>}]} {
    %c0 = arith.constant 0 : index
    %c0_0 = arith.constant 0 : index
    %c0_1 = arith.constant 0 : index
    %c0_2 = arith.constant 0 : index
    %0 = vector.load %arg3[%c0, %c0_0, %c0_1, %c0_2] : memref<1x1x1x256xf32, #tpu.memory_space<vmem>>, vector<1x1x1x256xf32>
    %1 = vector.shape_cast %0 : vector<1x1x1x256xf32> to vector<1x256xf32>
    %c0_3 = arith.constant 0 : index
    %c0_4 = arith.constant 0 : index
    %2 = vector.load %arg7[%c0_3, %c0_4] : memref<1x384xf32, #tpu.memory_space<vmem>>, vector<1x256xf32>
    tpu.vector_store %arg7[%c0_3, %c0_4], %1 {strides = array<i32>} : memref<1x384xf32, #tpu.memory_space<vmem>>, vector<1x256xf32>,
    %c0_5 = arith.constant 0 : index
    %c0_6 = arith.constant 0 : index
    %c0_7 = arith.constant 0 : index
    %c0_8 = arith.constant 0 : index
    %3 = vector.load %arg4[%c0_5, %c0_6, %c0_7, %c0_8] : memref<1x1x1x128xf32, #tpu.memory_space<vmem>>, vector<1x1x1x128xf32>
    %4 = vector.shape_cast %3 : vector<1x1x1x128xf32> to vector<1x128xf32>
    %c0_9 = arith.constant 0 : index
    %c256 = arith.constant 256 : index
    %5 = vector.load %arg7[%c0_9, %c256] : memref<1x384xf32, #tpu.memory_space<vmem>>, vector<1x128xf32>
    tpu.vector_store %arg7[%c0_9, %c256], %4 {strides = array<i32>} : memref<1x384xf32, #tpu.memory_space<vmem>>, vector<1x128xf32>,
    %c0_10 = arith.constant 0 : index
    %c0_11 = arith.constant 0 : index
    %6 = vector.load %arg7[%c0_10, %c0_11] : memref<1x384xf32, #tpu.memory_space<vmem>>, vector<1x256xf32>
    %c0_12 = arith.constant 0 : index
    %c1 = arith.constant 1 : index
    %7 = vector.load %arg7[%c0_12, %c1] : memref<1x384xf32, #tpu.memory_space<vmem>>, vector<1x256xf32>
    %c0_13 = arith.constant 0 : index
    %c2 = arith.constant 2 : index
    %8 = vector.load %arg7[%c0_13, %c2] : memref<1x384xf32, #tpu.memory_space<vmem>>, vector<1x256xf32>
    %c0_14 = arith.constant 0 : index
    %c3 = arith.constant 3 : index
    %9 = vector.load %arg7[%c0_14, %c3] : memref<1x384xf32, #tpu.memory_space<vmem>>, vector<1x256xf32>
    %c0_15 = arith.constant 0 : index
    %c4 = arith.constant 4 : index
    %10 = vector.load %arg7[%c0_15, %c4] : memref<1x384xf32, #tpu.memory_space<vmem>>, vector<1x256xf32>
    %c0_16 = arith.constant 0 : index
    %c5 = arith.constant 5 : index
    %11 = vector.load %arg7[%c0_16, %c5] : memref<1x384xf32, #tpu.memory_space<vmem>>, vector<1x256xf32>
    %c0_17 = arith.constant 0 : index
    %c6 = arith.constant 6 : index
    %12 = vector.load %arg7[%c0_17, %c6] : memref<1x384xf32, #tpu.memory_space<vmem>>, vector<1x256xf32>
    %c0_18 = arith.constant 0 : index
    %c7 = arith.constant 7 : index
    %13 = vector.load %arg7[%c0_18, %c7] : memref<1x384xf32, #tpu.memory_space<vmem>>, vector<1x256xf32>
    %14 = tpu.concatenate %6, %7, %8, %9, %10, %11, %12, %13 in 0 : vector<1x256xf32>, vector<1x256xf32>, vector<1x256xf32>, vector<1x256xf32>, vector<1x256xf32>, vector<1x256xf32>, vector<1x256xf32>, vector<1x256xf32> -> vector<8x256xf32>
    %c0_19 = arith.constant 0 : index
    %c0_20 = arith.constant 0 : index
    %15 = vector.load %arg8[%c0_19, %c0_20] : memref<16x256xf32, #tpu.memory_space<vmem>>, vector<8x256xf32>
    tpu.vector_store %arg8[%c0_19, %c0_20], %14 {strides = array<i32>} : memref<16x256xf32, #tpu.memory_space<vmem>>, vector<8x256xf32>,
    %c0_21 = arith.constant 0 : index
    %c8 = arith.constant 8 : index
    %16 = vector.load %arg7[%c0_21, %c8] : memref<1x384xf32, #tpu.memory_space<vmem>>, vector<1x256xf32>
    %c0_22 = arith.constant 0 : index
    %c9 = arith.constant 9 : index
    %17 = vector.load %arg7[%c0_22, %c9] : memref<1x384xf32, #tpu.memory_space<vmem>>, vector<1x256xf32>
    %c0_23 = arith.constant 0 : index
    %c10 = arith.constant 10 : index
    %18 = vector.load %arg7[%c0_23, %c10] : memref<1x384xf32, #tpu.memory_space<vmem>>, vector<1x256xf32>
    %c0_24 = arith.constant 0 : index
    %c10_25 = arith.constant 10 : index
    %19 = vector.load %arg7[%c0_24, %c10_25] : memref<1x384xf32, #tpu.memory_space<vmem>>, vector<1x256xf32>
    %c0_26 = arith.constant 0 : index
    %c10_27 = arith.constant 10 : index
    %20 = vector.load %arg7[%c0_26, %c10_27] : memref<1x384xf32, #tpu.memory_space<vmem>>, vector<1x256xf32>
    %c0_28 = arith.constant 0 : index
    %c10_29 = arith.constant 10 : index
    %21 = vector.load %arg7[%c0_28, %c10_29] : memref<1x384xf32, #tpu.memory_space<vmem>>, vector<1x256xf32>
    %c0_30 = arith.constant 0 : index
    %c10_31 = arith.constant 10 : index
    %22 = vector.load %arg7[%c0_30, %c10_31] : memref<1x384xf32, #tpu.memory_space<vmem>>, vector<1x256xf32>
    %c0_32 = arith.constant 0 : index
    %c10_33 = arith.constant 10 : index
    %23 = vector.load %arg7[%c0_32, %c10_33] : memref<1x384xf32, #tpu.memory_space<vmem>>, vector<1x256xf32>
    %24 = tpu.concatenate %16, %17, %18, %19, %20, %21, %22, %23 in 0 : vector<1x256xf32>, vector<1x256xf32>, vector<1x256xf32>, vector<1x256xf32>, vector<1x256xf32>, vector<1x256xf32>, vector<1x256xf32>, vector<1x256xf32> -> vector<8x256xf32>
    %c8_34 = arith.constant 8 : index
    %c0_35 = arith.constant 0 : index
    %25 = vector.load %arg8[%c8_34, %c0_35] : memref<16x256xf32, #tpu.memory_space<vmem>>, vector<8x256xf32>
    tpu.vector_store %arg8[%c8_34, %c0_35], %24 {strides = array<i32>} : memref<16x256xf32, #tpu.memory_space<vmem>>, vector<8x256xf32>,
    %c0_36 = arith.constant 0 : index
    %c0_37 = arith.constant 0 : index
    %26 = vector.load %arg8[%c0_36, %c0_37] : memref<16x256xf32, #tpu.memory_space<vmem>>, vector<16x256xf32>
    %c0_38 = arith.constant 0 : index
    %c0_39 = arith.constant 0 : index
    %c0_40 = arith.constant 0 : index
    %27 = vector.load %arg5[%c0_38, %c0_39, %c0_40] : memref<1x16x128xf32, #tpu.memory_space<vmem>>, vector<1x16x128xf32>
    %28 = vector.shape_cast %27 : vector<1x16x128xf32> to vector<16x128xf32>
    %cst = arith.constant dense<0.000000e+00> : vector<256x128xf32>
    %29 = tpu.matmul %26, %28, %cst {dimension_numbers = #tpu.dot_dimension_numbers<[0], [0], [1], [1], [0, 1, 1, 1], [], []>} : vector<16x256xf32>, vector<16x128xf32>, vector<256x128xf32> -> vector<256x128xf32>
    %c0_41 = arith.constant 0 : index
    %c0_42 = arith.constant 0 : index
    %c0_43 = arith.constant 0 : index
    %c0_44 = arith.constant 0 : index
    %30 = vector.load %arg6[%c0_41, %c0_42, %c0_43, %c0_44] : memref<1x1x256x128xf32, #tpu.memory_space<vmem>>, vector<1x1x256x128xf32>
    %31 = vector.shape_cast %30 : vector<1x1x256x128xf32> to vector<256x128xf32>
    %32 = vector.shape_cast %29 : vector<256x128xf32> to vector<1x1x256x128xf32>
    tpu.vector_store %arg6[%c0_41, %c0_42, %c0_43, %c0_44], %32 {strides = array<i32>} : memref<1x1x256x128xf32, #tpu.memory_space<vmem>>, vector<1x1x256x128xf32>,
    return
  }
  func.func @transform_0(%arg0: i32, %arg1: i32, %arg2: i32) -> (i32, i32, i32, i32) {
    %c0_i32 = arith.constant 0 : i32
    %c0_i32_0 = arith.constant 0 : i32
    return %arg0, %arg1, %c0_i32, %arg2 : i32, i32, i32, i32
  }
  func.func @transform_1(%arg0: i32, %arg1: i32, %arg2: i32) -> (i32, i32, i32, i32) {
    %c1_i32 = arith.constant 1 : i32
    %0 = arith.addi %arg2, %c1_i32 : i32
    %c2_i32 = arith.constant 2 : i32
    %1 = arith.muli %0, %c2_i32 : i32
    %c0_i32 = arith.constant 0 : i32
    %c0_i32_0 = arith.constant 0 : i32
    return %arg0, %arg1, %c0_i32, %1 : i32, i32, i32, i32
  }
  func.func @transform_2(%arg0: i32, %arg1: i32, %arg2: i32) -> (i32, i32, i32) {
    %c0_i32 = arith.constant 0 : i32
    %c0_i32_0 = arith.constant 0 : i32
    %c0_i32_1 = arith.constant 0 : i32
    return %arg1, %c0_i32, %c0_i32_0 : i32, i32, i32
  }
  func.func @transform_3(%arg0: i32, %arg1: i32, %arg2: i32) -> (i32, i32, i32, i32) {
    %c0_i32 = arith.constant 0 : i32
    %c0_i32_0 = arith.constant 0 : i32
    return %arg0, %arg1, %arg2, %c0_i32 : i32, i32, i32, i32
  }
}

</mosaic_0001>

<bundles_post_ra>
// kernel: tpu_custom_call.1
= control target key start
LH: loop header
LB: loop body
LE: loop exit
PB: predicated region body
PF: predicated region fallthrough
CT: control target
= control target key end

     0   :  { %s1813_s0 = inlined_call_operand.hbm [shape: f32[2,2,1,384], index: 0, kind: input, shape index: {}]   ;;  %s1814_s1 = inlined_call_operand.hbm [shape: f32[2,2,1,384], index: 1, kind: input, shape index: {}]   ;;  %s1815_s2 = inlined_call_operand.hbm [shape: f32[2,16,128], index: 2, kind: input, shape index: {}]   ;;  %s1816_s3 = inlined_call_operand.hbm [shape: f32[2,2,256,128], index: 3, kind: output, shape index: {}]  }
   0x1   :  { %1829 = sst [smem:[#allocation27_spill]] %s1814_s1 }
   0x2   :  { %1830 = sst [smem:[#allocation28_spill]] %s1816_s3 }
   0x3   :  { %8 = vsyncpa [#allocation5], 0 }
   0x4   :  { %10 = vsyncpa [#allocation5 + $0x1], 0 }
   0x5   :  { %11 = vsyncpa [#allocation8], 0 }
   0x6   :  { %13 = vsyncpa [#allocation8 + $0x1], 0 }
   0x7   :  { %14 = vsyncpa [#allocation6], 0 }
   0x8   :  { %16 = vsyncpa [#allocation6 + $0x1], 0  ;;  %s1418_s12 = smov 0   ;;  %s1420_s13 = smov 0  }
   0x9   :  { %s1422_s14 = smov 0   ;;  %s1424_s15 = smov 0  }
   0xa   :  { %s1426_s16 = smov 0   ;;  %s1428_s17 = smov 0  }
   0xb   :  { %s1430_s18 = smov 0   ;;  %s1432_s19 = smov 0  }
   0xc   :  { %s1434_s20 = smov 0   ;;  %s1436_s21 = smov 0  }
   0xd   :  { %s1438_s22 = smov 0  }
   0xe LB: > { %1831 = sst [smem:[#allocation15_spill]] %s1356_s15  ;;  %s1474_s23 = sadd.s32 4294967295, %s1384_s22   ;;  %s1384_s22 = sphi %s1438_s22, %s22_s22   ;;  %s1380_s21 = sphi %s1436_s21, %s1875_s21   ;;  %s1376_s20 = sphi %s1434_s20, %s1874_s20   ;;  %s1372_s19 = sphi %s1432_s19, %s1865_s19   ;;  %s1368_s18 = sphi %s1430_s18, %s1873_s18   ;;  %s1364_s17 = sphi %s1428_s17, %s1864_s17   ;;  %s1360_s16 = sphi %s1426_s16, %s1872_s16   ;;  %s1356_s15 = sphi %s1424_s15, %s1871_s15   ;;  %s1352_s14 = sphi %s1422_s14, %s1870_s14   ;;  %s1348_s13 = sphi %s1420_s13, %s1869_s13   ;;  %s1344_s12 = sphi %s1418_s12, %s1868_s12  }
   0xf   : > { %1832 = sst [smem:[#allocation16_spill]] %s1364_s17  ;;  %s981_s24 = sadd.s32 4294967294, %s1384_s22  }
  0x10   : > { %1833 = sst [smem:[#allocation17_spill]] %s1368_s18  ;;  %s37_s25 = sadd.s32 1, %s1376_s20 }
  0x11   : > { %1834 = sst [smem:[#allocation18_spill]] %s1372_s19  ;;  %s41_s26 = sadd.s32 1, %s1380_s21 }
  0x12   : > { %1835 = sst [smem:[#allocation19_spill]] %s1380_s21  ;;  %p39_p0 = scmp.ge.s32.totalorder %s37_s25, 2 }
  0x13   : > { %1836 = sst [smem:[#allocation20_spill]] %s1384_s22  ;;  %s52_s27 = sadd.s32 1, %s1364_s17 }
  0x14   : > { %p59_p1 = scmp.ne.s32.totalorder %s1364_s17, %s1360_s16  ;;  %p60_p2 = scmp.eq.s32.totalorder %s1384_s22, 0 }
  0x15   : > { %s1877_s25 = smov (%p39_p0, %s37_s25), 0  ;;  %s1879_s26 = smov (!%p39_p0, %s41_s26), %s1380_s21 }
  0x16   : > { %1837 = sst [smem:[#allocation21_spill]] %s1877_s25  ;;  %s46_s28 = ssub.s32 %s1376_s20, %s1877_s25 }
  0x17   : > { %p1493_p3 = por %p60_p2, %p59_p1  ;;  %p43_p4 = scmp.ge.s32.totalorder %s1879_s26, 2 }
  0x18   : > { %p1817_p5 = scmp.ne.s32.totalorder %s1360_s16, %s1356_s15  ;;  %p66_p6 = scmp.eq.s32.totalorder %s1474_s23, 0 }
  0x19   : > { %p110_p7 = scmp.eq.s32.totalorder %s46_s28, 0  ;;  %s1881_s26 = smov (%p43_p4, %s1879_s26), 0 }
  0x1a   : > { %1839 = sst [smem:[#allocation22_spill]] %s1881_s26  ;;  %p1507_p8 = por %p66_p6, %p1817_p5 }
  0x1b   : > { %s112_s4 = sadd.s32 1, %s1352_s14  ;;  %s45_s5 = ssub.s32 %s1380_s21, %s1881_s26 }
  0x1c   : > { %p119_p9 = scmp.ne.s32.totalorder %s1352_s14, %s1348_s13  ;;  %s47_s6 = sor.u32 %s46_s28, %s45_s5 }
  0x1d   : > { %p125_p10 = scmp.ne.s32.totalorder %s1348_s13, %s1344_s12  ;;  %p50_p11 = scmp.eq.s32.totalorder %s47_s6, 0 }
  0x1e   : > { %p1520_p12 = por %p119_p9, %p60_p2  ;;  %p153_p0 = scmp.eq.s32.totalorder %s1474_s23, 3 }
  0x1f   : > { %s1525_s8 = scalar_select %p110_p7, %s1352_s14, %s112_s4  }
  0x20   : > { %s1528_s9 = scalar_select %p50_p11, %s1364_s17, %s52_s27  }
  0x21   : > { %1842 = sst [smem:[#allocation23_spill]] %s1525_s8  ;;  %p1532_p13 = por %p125_p10, %p66_p6 }
  0x22   : > { %1843 = sst [smem:[#allocation24_spill]] %s1528_s9  ;;  %p159_p4 = scmp.eq.s32.totalorder %s981_s24, 3 }
  0x23   : > { %p1540_p5 = por %p153_p0, %p59_p1  ;;  %p1061_p2 = scmp.lt.s32.totalorder %s1384_s22, 4 }
  0x24   : > { %p1847_p9 = scmp.ne.s32.totalorder %s1360_s16, %s1356_s15  ;;  %s1553_s27 = sand.u32 1, %s1364_s17  }
  0x25   : > { %s1845_s11 = scalar_select %p1540_p5, 1, 0 }
  0x26   : > { %p1548_p7 = por %p159_p4, %p1847_p9  ;;  %s1037_s28 = smul.u32 3, %s1376_s20 }
  0x27   : > { %1846 = sst [smem:[#allocation25_spill]] %s1845_s11  ;;  %p1560_p6 = pnand %p1061_p2, %p1493_p3 }
  0x28   : > { %s1848_s12 = scalar_select %p1548_p7, 1, 0 }
  0x29   : > { %s1038_s4 = smul.u32 6, %s1380_s21  ;;  %s207_s5 = sand.u32 1, %s1384_s22  }
  0x2a   : > { %1849 = sst [smem:[#allocation26_spill]] %s1848_s12  ;;  %s210_s17 = scalar_lea.vmem [#allocation7], %s1553_s27 }
  0x2b   : > { %s195_s6 = sadd.s32 %s1038_s4, %s1037_s28  ;;  %s1851_s1 = sld [smem:[#allocation27_spill]] }
  0x2c   : > { %s223_s8 = sshll.u32 %s210_s17, 4  ;;  %p1574_p1 = pnand %p1061_p2, %p1520_p12  ;;  %s224_s8 = int_to_ptr.vmem [resolvable:$true] %s223_s8 }
  0x2d   : > { %p988_p3 = scmp.ge.s32.totalorder %s1384_s22, 1  ;;  %s208_s28 = scalar_lea.sflag [#allocation8], %s207_s5 }
  0x2e   : > { %p250_p10 = scmp.lt.s32.totalorder %s1384_s22, 5  ;;  %s984_s25 = sshll.u32 %s1553_s27, 1 }
  0x2f   : > { %s183_s4 = scalar_lea.vmem [#allocation4], %s984_s25  ;;  %s232_s21 = sand.u32 1, %s1352_s14  }
  0x30   : > { %p1582_p11 = pnand %p988_p3, %p250_p10  ;;  %s180_s5 = scalar_lea.sflag [#allocation5], %s1553_s27 }
  0x31   : > { %s885_s9 = scalar_lea.hbm %s1851_s1, %s195_s6  ;;  %s200_s1 = sshll.u32 %s183_s4, 4  ;;  %s201_s1 = int_to_ptr.vmem [resolvable:$true] %s200_s1 }
  0x32   : > { %s886_s12 = scalar_lea.hbm %s885_s9, 2  ;;  %s196_s9 = scalar_lea.hbm %s1813_s0, %s195_s6 }
  0x33   : > { %s221_s29 = sshll.u32 %s886_s12, 4  ;;  %s198_s12 = sshll.u32 %s196_s9, 4  ;;  %s222_s29 = int_to_ptr.hbm [resolvable:$true] %s221_s29  ;;  %s199_s12 = int_to_ptr.hbm [resolvable:$true] %s198_s12 }
  0x34   : > { %1053 = dma.hbm_to_vmem [thread:$0]  (!%p1560_p6), %s222_s29, 16, %s224_s8, %s208_s28  }
  0x35   : > { %1050 = dma.hbm_to_vmem [thread:$0]  (!%p1560_p6), %s199_s12, 32, %s201_s1, %s180_s5  }
  0x36   : > { %s985_s8 = sshll.u32 %s232_s21, 4  ;;  %s1030_s29 = sshll.u32 %s1376_s20, 4 }
  0x37   : > { %s239_s3 = scalar_lea.hbm %s1815_s2, %s1030_s29  ;;  %s234_s18 = scalar_lea.vmem [#allocation9], %s985_s8 }
  0x38   : > { %s240_s19 = sshll.u32 %s239_s3, 4  ;;  %s242_s26 = sshll.u32 %s234_s18, 4  ;;  %s241_s19 = int_to_ptr.hbm [resolvable:$true] %s240_s19  ;;  %s243_s26 = int_to_ptr.vmem [resolvable:$true] %s242_s26 }
  0x39   : > { %s1386_s6 = smov 128   ;;  %s1387_s25 = smov 8  }
  0x3a   : > { %1056 = dma.hbm_to_vmem [thread:$0]  (!%p1574_p1), %s241_s19, 256, %s243_s26, %s208_s28, %s1386_s6, %s1386_s6, %s1387_s25  }
  0x3b   : > { %254 = sbr.rel (%p1582_p11) target bundleno = 746 (0x2ea), region = 32  ;;  %s1603_s1 = sand.u32 (!%p1582_p11), 1, %s1360_s16  }
  0x3c   : > { %s989_s21 = sshll.u32 (!%p1582_p11), %s1603_s1, 1  ;;  %s257_s22 = scalar_lea.sflag (!%p1582_p11), [#allocation5], %s1603_s1 }
  0x3d   : > { %s260_s3 = scalar_lea.vmem (!%p1582_p11), [#allocation4], %s989_s21 }
  0x40   : > { %1327 = dma.done.wait (%p1507_p8), %s257_s22, 32  }
  0x41   : > { %1329 = vsyncadd (%p1507_p8), %s257_s22, 4294967264  ;;  %s266_s15 = sand.u32 1, %s1474_s23   ;;  %s269_s19 = scalar_lea.vmem [#allocation7], %s1603_s1 }
  0x42   : > { %s267_s18 = scalar_lea.sflag [#allocation8], %s266_s15 }
  0x43   : > { %1331 = dma.done.wait (%p1507_p8), %s267_s18, 16  }
  0x44   : > { %1333 = vsyncadd (%p1507_p8), %s267_s18, 4294967280  ;;  %s277_s11 = sand.u32 1, %s1348_s13  }
  0x45   : > { %s1618_s27 = sshll.u32 %s277_s11, 4 }
  0x46   : > { %s279_s24 = scalar_lea.vmem [#allocation9], %s1618_s27 }
  0x47   : > { %1335 = dma.done.wait (%p1532_p13), %s267_s18, 256  }
  0x48   : > { %1337 = vsyncadd (%p1532_p13), %s267_s18, 4294967040  ;;  %v320_v0 = vlaneseq  ;;  %v319_v1 = vld [vmem:[%s260_s3] sm:$0x3]  ;;  %v325_v2 = vld [vmem:[%s269_s19] sm:$0x1]  ;;  %s1388_s23 = smov 126  }
  0x49   : > { %s1389_s30 = smov 127   ;;  %s1390_s10 = smov 125   ;;  %vm346_vm2 = vcmask 1039360   ;;  %vm417_vm3 = vcmask 1040384   ;;  %vm357_vm4 = vcmask 1031168   ;;  %vm420_vm5 = vcmask 1041408  }
  0x4a   : > { %vm322_vm0 = vcmp.lt.s32.totalorder %v320_v0, 256  ;;  %vm326_vm1 = vcmp.lt.s32.totalorder %v320_v0, 128  ;;  %s1391_s28 = smov 124   ;;  %s1392_s17 = smov 123   ;;  %vm423_vm6 = vcmask 1042432   ;;  %vm426_vm7 = vcmask 1043456  }
  0x4b   : > { %324 = vst.msk [vmem:[#allocation2] sm:$0x3] %vm322_vm0, %v319_v1  ;;  %s1393_s7 = smov 122   ;;  %s1394_s9 = smov 121   ;;  %vm429_vm8 = vcmask 1044480   ;;  %vm432_vm9 = vcmask 1045504  }
  0x4c   : > { %328 = vst.msk [vmem:[#allocation2 + $0x2] sm:$0x1] %vm326_vm1, %v325_v2  ;;  %vm435_vm10 = vcmask 1046528   ;;  %s1395_s12 = smov 120   ;;  %vm368_vm11 = vcmask 1022976   ;;  %vm379_vm12 = vcmask 1014784  }
  0x4d   : > { %vm390_vm13 = vcmask 1006592   ;;  %vm401_vm14 = vcmask 998400   ;;  %vm412_vm15 = vcmask 990208   ;;  %vm500_vm0 = vcmask 982016   ;;  %s991_s4 = sshll.u32 %s1603_s1, 8  ;;  %s1854_s8 = sld [smem:[#allocation17_spill]] }
  0x4e   : > { %vm577_vm1 = vcmask 130048   ;;  %s1725_s5 = scalar_lea.vmem [#allocation10], %s991_s4  ;;  %s1855_s29 = sld [smem:[#allocation18_spill]] }
  0x4f   : > { %s1856_s15 = sld [smem:[#allocation28_spill]]  ;;  %s836_s27 = sshll.u32 %s1725_s5, 4  ;;  %s837_s27 = int_to_ptr.vmem [resolvable:$true] %s836_s27 }
  0x52   : > { %v329_v48 = vld [vmem:[#allocation2] sm:$0x3] }
  0x53   : > { %v440_v3 = vld [vmem:[#allocation2] sm:$0x7]  ;;  %v333_v50 = vperm.slane %v329_v48, 1  ;;  %s1025_s26 = sshll.u32 %s1854_s8, 5 }
  0x54   : > { %v443_v4 = vperm.slane %v440_v3, 1  ;;  %v442_v5 = vperm.slane %v440_v3, 0  ;;  %v444_v6 = vperm.slane %v440_v3, 2  ;;  %v330_v7 = vld [vmem:[#allocation2] sm:$0x7]  ;;  %s1026_s6 = sshll.u32 %s1855_s29, 6 }
  0x55   : > { %v338_v8 = vperm.slane %v330_v7, 1  ;;  %v339_v9 = vperm.slane %v330_v7, 2  ;;  %v337_v10 = vperm.slane %v330_v7, 0  ;;  %s833_s25 = sadd.s32 %s1026_s6, %s1025_s26  ;;  %s1857_s11 = smov %s1856_s15 }
  0x56   : > { %461 = vrot.lane.b32.xlu1 %v443_v4, %s1388_s23  ;;  %450 = vrot.lane.b32.xlu0 %v443_v4, %s1389_s30  ;;  %s1027_s21 = sshll.u32 %s833_s25, 3 }
  0x57   : > { %448 = vrot.lane.b32.xlu2 %v442_v5, %s1389_s30  ;;  %s835_s19 = scalar_lea.hbm %s1856_s15, %s1027_s21 }
  0x5e   : > { %463 = vrot.lane.b32.xlu1 %v444_v6, %s1388_s23  ;;  %452 = vrot.lane.b32.xlu0 %v444_v6, %s1389_s30 }
  0x5f   : > { %459 = vrot.lane.b32.xlu2 %v442_v5, %s1388_s23 }
  0x66   : > { %342 = vrot.lane.b32.xlu0 %v338_v8, %s1389_s30  ;;  %344 = vrot.lane.b32.xlu1 %v339_v9, %s1389_s30 }
  0x67   : > { %353 = vrot.lane.b32.xlu2 %v338_v8, %s1388_s23 }
  0x6e   : > { %355 = vrot.lane.b32.xlu0 %v339_v9, %s1388_s23  ;;  %364 = vrot.lane.b32.xlu1 %v338_v8, %s1390_s10 }
  0x6f   : > { %366 = vrot.lane.b32.xlu2 %v339_v9, %s1390_s10 }
  0x76   : > { %375 = vrot.lane.b32.xlu0 %v338_v8, %s1391_s28  ;;  %377 = vrot.lane.b32.xlu1 %v339_v9, %s1391_s28 }
  0x77   : > { %386 = vrot.lane.b32.xlu2 %v338_v8, %s1392_s17 }
  0x7e   : > { %388 = vrot.lane.b32.xlu0 %v339_v9, %s1392_s17  ;;  %397 = vrot.lane.b32.xlu1 %v338_v8, %s1393_s7 }
  0x7f   : > { %399 = vrot.lane.b32.xlu2 %v339_v9, %s1393_s7 }
  0x86   : > { %340 = vrot.lane.b32.xlu0 %v337_v10, %s1389_s30  ;;  %408 = vrot.lane.b32.xlu1 %v338_v8, %s1394_s9 }
  0x87   : > { %410 = vrot.lane.b32.xlu2 %v339_v9, %s1394_s9  ;;  %v332_v9 = vperm.slane %v329_v48, 0 }
  0x8e   : > { %351 = vrot.lane.b32.xlu0 %v337_v10, %s1388_s23  ;;  %362 = vrot.lane.b32.xlu1 %v337_v10, %s1390_s10  ;;  %s820_s23 = scalar_lea.sflag [#allocation6], %s1603_s1 }
  0x8f   : > { %373 = vrot.lane.b32.xlu2 %v337_v10, %s1391_s28 }
  0x96   : > { %384 = vrot.lane.b32.xlu0 %v337_v10, %s1392_s17  ;;  %406 = vrot.lane.b32.xlu1 %v337_v10, %s1394_s9 }
  0x9e   : > { %395 = vrot.lane.b32.xlu0 %v337_v10, %s1393_s7  ;;  %s1274_s7 = scalar_lea.hbm %s1857_s11, 1024 }
  0xb1   : > { %v449_v11 = vpop.permute.xlu2 %448 }
  0xb9   : > { %v460_v12 = vpop.permute.xlu2 %459 }
  0xc1   : > { %v1634_v18 = vpop.permute.xlu2 %353 }
  0xc8   : > { %v462_v13 = vpop.permute.xlu1 %461  ;;  %v451_v14 = vpop.permute.xlu0 %450 }
  0xc9   : > { %v454_v15 = vsel %vm346_vm2, %v449_v11, %v451_v14  ;;  %v465_v17 = vsel %vm357_vm4, %v460_v12, %v462_v13  ;;  %v367_v43 = vpop.permute.xlu2 %366 }
  0xca   : > { %v470_v16 = vsel %vm417_vm3, %v442_v5, %v454_v15 }
  0xcb   : > { %v473_v21 = vsel %vm420_vm5, %v470_v16, %v465_v17 }
  0xcc   : > { %v476_v29 = vsel %vm423_vm6, %v473_v21, %v465_v17 }
  0xcd   : > { %v479_v36 = vsel %vm426_vm7, %v476_v29, %v465_v17 }
  0xce   : > { %v482_v42 = vsel %vm429_vm8, %v479_v36, %v465_v17 }
  0xcf   : > { %v485_v44 = vsel %vm432_vm9, %v482_v42, %v465_v17 }
  0xd0   : > { %v464_v19 = vpop.permute.xlu1 %463  ;;  %v453_v20 = vpop.permute.xlu0 %452  ;;  %v488_v45 = vsel %vm435_vm10, %v485_v44, %v465_v17 }
  0xd1   : > { %v466_v22 = vsel %vm357_vm4, %v462_v13, %v464_v19  ;;  %v455_v23 = vsel %vm346_vm2, %v451_v14, %v453_v20  ;;  %v472_v24 = vsel %vm417_vm3, %v444_v6, %v453_v20  ;;  %v387_v49 = vpop.permute.xlu2 %386 }
  0xd2   : > { %v471_v25 = vsel %vm417_vm3, %v443_v4, %v455_v23  ;;  %v475_v26 = vsel %vm420_vm5, %v472_v24, %v464_v19 }
  0xd3   : > { %v474_v27 = vsel %vm420_vm5, %v471_v25, %v466_v22  ;;  %v478_v28 = vsel %vm423_vm6, %v475_v26, %v464_v19 }
  0xd4   : > { %v477_v30 = vsel %vm423_vm6, %v474_v27, %v466_v22  ;;  %v481_v31 = vsel %vm426_vm7, %v478_v28, %v464_v19 }
  0xd5   : > { %v484_v32 = vsel %vm429_vm8, %v481_v31, %v464_v19  ;;  %v480_v33 = vsel %vm426_vm7, %v477_v30, %v466_v22  ;;  %v512_v30 = vld [vmem:[%s279_s24 + $0x8] sm:$0xff]  ;;  %v511_v31 = vld [vmem:[%s279_s24] sm:$0xff]  ;;  %s838_s24 = sshll.u32 %s835_s19, 4  ;;  %s839_s24 = int_to_ptr.hbm [resolvable:$true] %s838_s24 }
  0xd6   : > { %v487_v34 = vsel %vm432_vm9, %v484_v32, %v464_v19  ;;  %v483_v35 = vsel %vm429_vm8, %v480_v33, %v466_v22  ;;  %1032 = vmatpush.msra.mxu2 %v512_v30  ;;  %688 = vmatpush.msra.mxu0 %v512_v30  ;;  %s1268_s30 = sshra.s32 %s839_s24, 4  ;;  %s1269_s30 = int_to_ptr.hbm [resolvable:$true] %s1268_s30 }
  0xd7   : > { %v490_v37 = vsel %vm435_vm10, %v487_v34, %v464_v19  ;;  %v486_v38 = vsel %vm432_vm9, %v483_v35, %v466_v22  ;;  %1033 = vmatpush.msra.mxu3 %v512_v30  ;;  %1031 = vmatpush.msra.mxu1 %v512_v30  ;;  %s1270_s10 = scalar_lea.hbm %s1269_s30, 256  ;;  %p1275_p0 = scmp.lt.s32.totalorder %s1269_s30, %s1857_s11 }
  0xd8   : > { %498 = vrot.lane.b32.xlu2 %v490_v37, %s1395_s12  ;;  %v489_v39 = vsel %vm435_vm10, %v486_v38, %v466_v22  ;;  %v343_v40 = vpop.permute.xlu0 %342  ;;  %v345_v41 = vpop.permute.xlu1 %344  ;;  %1035 = vmatpush.msra.mxu2 %v511_v31  ;;  %p1271_p8 = scmp.ne.s32.totalorder %s1269_s30, %s1270_s10  ;;  %p1276_p4 = scmp.lt.s32.totalorder %s1274_s7, %s1270_s10 }
  0xd9   : > { %496 = vrot.lane.b32.xlu1 %v489_v39, %s1395_s12  ;;  %v348_v51 = vsel %vm346_vm2, %v343_v40, %v345_v41  ;;  %v400_v58 = vpop.permute.xlu2 %399  ;;  %689 = vmatpush.msra.mxu0 %v511_v31 }
  0xda   : > { %v419_v52 = vsel %vm417_vm3, %v333_v50, %v348_v51  ;;  %1036 = vmatpush.msra.mxu3 %v511_v31  ;;  %1034 = vmatpush.msra.mxu1 %v511_v31  ;;  %p1272_p12 = pnand %p1271_p8, %p1540_p5  ;;  %p1277_p2 = por %p1276_p4, %p1275_p0 }
  0xdc   : > { %p1273_p13 = pneg %p1272_p12 }
  0xde   : > { %p1278_p9 = pnand %p1277_p2, %p1273_p13 }
  0xe0   : > { %494 = vrot.lane.b32.xlu2 %v488_v45, %s1395_s12  ;;  %v356_v46 = vpop.permute.xlu0 %355  ;;  %v365_v47 = vpop.permute.xlu1 %364 }
  0xe1   : > { %v359_v53 = vsel %vm357_vm4, %v1634_v18, %v356_v46  ;;  %v370_v57 = vsel %vm368_vm11, %v365_v47, %v367_v43  ;;  %v411_v3 = vpop.permute.xlu2 %410 }
  0xe2   : > { %v422_v56 = vsel %vm420_vm5, %v419_v52, %v359_v53 }
  0xe3   : > { %v425_v59 = vsel %vm423_vm6, %v422_v56, %v370_v57 }
  0xe8   : > { %v376_v54 = vpop.permute.xlu0 %375  ;;  %v378_v55 = vpop.permute.xlu1 %377 }
  0xe9   : > { %v381_v60 = vsel %vm379_vm12, %v376_v54, %v378_v55  ;;  %v374_v17 = vpop.permute.xlu2 %373 }
  0xea   : > { %v428_v63 = vsel %vm426_vm7, %v425_v59, %v381_v60  ;;  %v380_v21 = vsel %vm379_vm12, %v374_v17, %v376_v54 }
  0xf0   : > { %v389_v61 = vpop.permute.xlu0 %388  ;;  %v398_v62 = vpop.permute.xlu1 %397 }
  0xf1   : > { %v392_v0 = vsel %vm390_vm13, %v387_v49, %v389_v61  ;;  %v403_v2 = vsel %vm401_vm14, %v398_v62, %v400_v58 }
  0xf2   : > { %v431_v1 = vsel %vm429_vm8, %v428_v63, %v392_v0 }
  0xf3   : > { %v434_v4 = vsel %vm432_vm9, %v431_v1, %v403_v2 }
  0xf8   : > { %v341_v5 = vpop.permute.xlu0 %340  ;;  %v409_v6 = vpop.permute.xlu1 %408 }
  0xf9   : > { %v414_v7 = vsel %vm412_vm15, %v409_v6, %v411_v3  ;;  %v347_v10 = vsel %vm346_vm2, %v341_v5, %v343_v40 }
  0xfa   : > { %v437_v8 = vsel %vm435_vm10, %v434_v4, %v414_v7  ;;  %v418_v12 = vsel %vm417_vm3, %v332_v9, %v347_v10 }
  0xfb   : > { %545 = vxpose.xlu0.b32.start [1/2] (short) %v437_v8, 128 }
 0x100   : > { %v352_v11 = vpop.permute.xlu0 %351  ;;  %v363_v14 = vpop.permute.xlu1 %362 }
 0x101   : > { %v358_v13 = vsel %vm357_vm4, %v352_v11, %v1634_v18  ;;  %v369_v16 = vsel %vm368_vm11, %v363_v14, %v365_v47 }
 0x102   : > { %v421_v15 = vsel %vm420_vm5, %v418_v12, %v358_v13 }
 0x103   : > { %v424_v20 = vsel %vm423_vm6, %v421_v15, %v369_v16 }
 0x104   : > { %v427_v23 = vsel %vm426_vm7, %v424_v20, %v380_v21 }
 0x108   : > { %v385_v19 = vpop.permute.xlu0 %384  ;;  %v407_v24 = vpop.permute.xlu1 %406 }
 0x109   : > { %v391_v22 = vsel %vm390_vm13, %v385_v19, %v387_v49  ;;  %v413_v26 = vsel %vm412_vm15, %v407_v24, %v409_v6 }
 0x10a   : > { %v430_v18 = vsel %vm429_vm8, %v427_v23, %v391_v22 }
 0x110   : > { %v396_v25 = vpop.permute.xlu0 %395 }
 0x111   : > { %v402_v27 = vsel %vm401_vm14, %v396_v25, %v398_v62 }
 0x112   : > { %v433_v28 = vsel %vm432_vm9, %v430_v18, %v402_v27 }
 0x113   : > { %v436_v29 = vsel %vm435_vm10, %v433_v28, %v413_v26 }
 0x114   : > { %513 = vxpose.xlu1.b32.start [1/2] (short) %v436_v29, 128 }
 0x132   : > { %v499_v32 = vpop.permute.xlu2 %498 }
 0x13a   : > { %v495_v33 = vpop.permute.xlu2 %494 }
 0x14b   : > { %v497_v34 = vpop.permute.xlu1 %496 }
 0x14c   : > { %v502_v35 = vsel %vm500_vm0, %v497_v34, %v499_v32  ;;  %v501_v36 = vsel %vm500_vm0, %v495_v33, %v497_v34 }
 0x14d   : > { %546 = vxpose.xlu0.b32.end [2/2] (short) %v502_v35, 128  ;;  %514 = vxpose.xlu1.b32.end [2/2] (short) %v501_v36, 128 }
 0x1e9   : > { %v561_v37 = vpop.trf.xlu0  ;;  %v529_v38 = vpop.trf.xlu1 }
 0x1ea   : > { %1008 = vmatmul.msk.f32.vlgmr.msra.gmra.mxu2 %vm577_vm1, %v561_v37  ;;  %992 = vmatmul.msk.f32.vlgmr.msra.gmra.mxu0 %vm577_vm1, %v529_v38 }
 0x1f1   : > { %v562_v39 = vpop.trf.xlu0  ;;  %v530_v40 = vpop.trf.xlu1 }
 0x1f2   : > { %1009 = vmatmul.msk.f32.gmra.mxu2 %vm577_vm1, %v562_v39  ;;  %993 = vmatmul.msk.f32.gmra.mxu0 %vm577_vm1, %v530_v40 }
 0x1f9   : > { %v563_v41 = vpop.trf.xlu0  ;;  %v531_v42 = vpop.trf.xlu1 }
 0x1fa   : > { %1010 = vmatmul.msk.f32.gmra.mxu2 %vm577_vm1, %v563_v41  ;;  %994 = vmatmul.msk.f32.gmra.mxu0 %vm577_vm1, %v531_v42 }
 0x201   : > { %v564_v43 = vpop.trf.xlu0  ;;  %v532_v44 = vpop.trf.xlu1 }
 0x202   : > { %1011 = vmatmul.msk.f32.gmra.mxu2 %vm577_vm1, %v564_v43  ;;  %995 = vmatmul.msk.f32.gmra.mxu0 %vm577_vm1, %v532_v44 }
 0x209   : > { %v565_v45 = vpop.trf.xlu0  ;;  %v533_v46 = vpop.trf.xlu1 }
 0x20a   : > { %1012 = vmatmul.msk.f32.gmra.mxu2 %vm577_vm1, %v565_v45  ;;  %996 = vmatmul.msk.f32.gmra.mxu0 %vm577_vm1, %v533_v46 }
 0x211   : > { %v566_v47 = vpop.trf.xlu0  ;;  %v534_v48 = vpop.trf.xlu1 }
 0x212   : > { %1013 = vmatmul.msk.f32.gmra.mxu2 %vm577_vm1, %v566_v47  ;;  %997 = vmatmul.msk.f32.gmra.mxu0 %vm577_vm1, %v534_v48 }
 0x219   : > { %v567_v49 = vpop.trf.xlu0  ;;  %v535_v50 = vpop.trf.xlu1 }
 0x21a   : > { %1014 = vmatmul.msk.f32.gmra.mxu2 %vm577_vm1, %v567_v49  ;;  %998 = vmatmul.msk.f32.gmra.mxu0 %vm577_vm1, %v535_v50 }
 0x221   : > { %v568_v51 = vpop.trf.xlu0  ;;  %v536_v52 = vpop.trf.xlu1 }
 0x222   : > { %1015 = vmatmul.msk.f32.gmra.mxu2 %vm577_vm1, %v568_v51  ;;  %999 = vmatmul.msk.f32.gmra.mxu0 %vm577_vm1, %v536_v52 }
 0x229   : > { %v569_v53 = vpop.trf.xlu0  ;;  %v537_v54 = vpop.trf.xlu1 }
 0x22a   : > { %1016 = vmatmul.msk.f32.vlgmr.msra.gmra.mxu3 %vm577_vm1, %v569_v53  ;;  %1000 = vmatmul.msk.f32.vlgmr.msra.gmra.mxu1 %vm577_vm1, %v537_v54 }
 0x231   : > { %v570_v55 = vpop.trf.xlu0  ;;  %v538_v56 = vpop.trf.xlu1 }
 0x232   : > { %1017 = vmatmul.msk.f32.gmra.mxu3 %vm577_vm1, %v570_v55  ;;  %1001 = vmatmul.msk.f32.gmra.mxu1 %vm577_vm1, %v538_v56 }
 0x239   : > { %v571_v57 = vpop.trf.xlu0  ;;  %v539_v58 = vpop.trf.xlu1 }
 0x23a   : > { %1018 = vmatmul.msk.f32.gmra.mxu3 %vm577_vm1, %v571_v57  ;;  %1002 = vmatmul.msk.f32.gmra.mxu1 %vm577_vm1, %v539_v58 }
 0x241   : > { %v572_v59 = vpop.trf.xlu0  ;;  %v540_v60 = vpop.trf.xlu1 }
 0x242   : > { %1019 = vmatmul.msk.f32.gmra.mxu3 %vm577_vm1, %v572_v59  ;;  %1003 = vmatmul.msk.f32.gmra.mxu1 %vm577_vm1, %v540_v60 }
 0x249   : > { %v573_v61 = vpop.trf.xlu0  ;;  %v541_v62 = vpop.trf.xlu1 }
 0x24a   : > { %1020 = vmatmul.msk.f32.gmra.mxu3 %vm577_vm1, %v573_v61  ;;  %1004 = vmatmul.msk.f32.gmra.mxu1 %vm577_vm1, %v541_v62 }
 0x251   : > { %v574_v63 = vpop.trf.xlu0  ;;  %v542_v0 = vpop.trf.xlu1 }
 0x252   : > { %1021 = vmatmul.msk.f32.gmra.mxu3 %vm577_vm1, %v574_v63  ;;  %1005 = vmatmul.msk.f32.gmra.mxu1 %vm577_vm1, %v542_v0 }
 0x259   : > { %v575_v1 = vpop.trf.xlu0  ;;  %v543_v2 = vpop.trf.xlu1 }
 0x25a   : > { %1022 = vmatmul.msk.f32.gmra.mxu3 %vm577_vm1, %v575_v1  ;;  %1006 = vmatmul.msk.f32.gmra.mxu1 %vm577_vm1, %v543_v2 }
 0x261   : > { %v576_v3 = vpop.trf.xlu0  ;;  %v544_v4 = vpop.trf.xlu1 }
 0x262   : > { %1023 = vmatmul.msk.f32.gmra.mxu3 %vm577_vm1, %v576_v3  ;;  %1007 = vmatmul.msk.f32.gmra.mxu1 %vm577_vm1, %v544_v4 }
 0x267   : > { %v691_v5 = vpop.f32.mrf.mxu0 }
 0x268   : > { %787 = vst [vmem:[%s1725_s5] sm:$0xff] %v691_v5 }
 0x26d   : > { %v739_v6 = vpop.f32.mrf.mxu2 }
 0x26e   : > { %803 = vst [vmem:[%s1725_s5 + $0x80] sm:$0xff] %v739_v6 }
 0x26f   : > { %v694_v7 = vpop.f32.mrf.mxu0 }
 0x270   : > { %788 = vst [vmem:[%s1725_s5 + $0x8] sm:$0xff] %v694_v7 }
 0x275   : > { %v742_v8 = vpop.f32.mrf.mxu2 }
 0x276   : > { %804 = vst [vmem:[%s1725_s5 + $0x88] sm:$0xff] %v742_v8 }
 0x277   : > { %v697_v9 = vpop.f32.mrf.mxu0 }
 0x278   : > { %789 = vst [vmem:[%s1725_s5 + $0x10] sm:$0xff] %v697_v9 }
 0x27d   : > { %v745_v10 = vpop.f32.mrf.mxu2 }
 0x27e   : > { %805 = vst [vmem:[%s1725_s5 + $0x90] sm:$0xff] %v745_v10 }
 0x27f   : > { %v700_v11 = vpop.f32.mrf.mxu0 }
 0x280   : > { %790 = vst [vmem:[%s1725_s5 + $0x18] sm:$0xff] %v700_v11 }
 0x285   : > { %v748_v12 = vpop.f32.mrf.mxu2 }
 0x286   : > { %806 = vst [vmem:[%s1725_s5 + $0x98] sm:$0xff] %v748_v12 }
 0x287   : > { %v703_v13 = vpop.f32.mrf.mxu0 }
 0x288   : > { %791 = vst [vmem:[%s1725_s5 + $0x20] sm:$0xff] %v703_v13 }
 0x28d   : > { %v751_v14 = vpop.f32.mrf.mxu2 }
 0x28e   : > { %807 = vst [vmem:[%s1725_s5 + $0xa0] sm:$0xff] %v751_v14 }
 0x28f   : > { %v706_v15 = vpop.f32.mrf.mxu0 }
 0x290   : > { %792 = vst [vmem:[%s1725_s5 + $0x28] sm:$0xff] %v706_v15 }
 0x295   : > { %v754_v16 = vpop.f32.mrf.mxu2 }
 0x296   : > { %808 = vst [vmem:[%s1725_s5 + $0xa8] sm:$0xff] %v754_v16 }
 0x297   : > { %v709_v17 = vpop.f32.mrf.mxu0 }
 0x298   : > { %793 = vst [vmem:[%s1725_s5 + $0x30] sm:$0xff] %v709_v17 }
 0x29d   : > { %v757_v19 = vpop.f32.mrf.mxu2 }
 0x29e   : > { %809 = vst [vmem:[%s1725_s5 + $0xb0] sm:$0xff] %v757_v19 }
 0x29f   : > { %v712_v20 = vpop.f32.mrf.mxu0 }
 0x2a0   : > { %794 = vst [vmem:[%s1725_s5 + $0x38] sm:$0xff] %v712_v20 }
 0x2a5   : > { %v760_v21 = vpop.f32.mrf.mxu2 }
 0x2a6   : > { %810 = vst [vmem:[%s1725_s5 + $0xb8] sm:$0xff] %v760_v21 }
 0x2a7   : > { %v715_v22 = vpop.f32.mrf.mxu1 }
 0x2a8   : > { %795 = vst [vmem:[%s1725_s5 + $0x40] sm:$0xff] %v715_v22 }
 0x2ad   : > { %v763_v23 = vpop.f32.mrf.mxu3 }
 0x2ae   : > { %811 = vst [vmem:[%s1725_s5 + $0xc0] sm:$0xff] %v763_v23 }
 0x2af   : > { %v718_v24 = vpop.f32.mrf.mxu1 }
 0x2b0   : > { %796 = vst [vmem:[%s1725_s5 + $0x48] sm:$0xff] %v718_v24 }
 0x2b5   : > { %v766_v18 = vpop.f32.mrf.mxu3 }
 0x2b6   : > { %812 = vst [vmem:[%s1725_s5 + $0xc8] sm:$0xff] %v766_v18 }
 0x2b7   : > { %v721_v25 = vpop.f32.mrf.mxu1 }
 0x2b8   : > { %797 = vst [vmem:[%s1725_s5 + $0x50] sm:$0xff] %v721_v25 }
 0x2bd   : > { %v769_v26 = vpop.f32.mrf.mxu3 }
 0x2be   : > { %813 = vst [vmem:[%s1725_s5 + $0xd0] sm:$0xff] %v769_v26 }
 0x2bf   : > { %v724_v27 = vpop.f32.mrf.mxu1 }
 0x2c0   : > { %798 = vst [vmem:[%s1725_s5 + $0x58] sm:$0xff] %v724_v27 }
 0x2c5   : > { %v772_v28 = vpop.f32.mrf.mxu3 }
 0x2c6   : > { %814 = vst [vmem:[%s1725_s5 + $0xd8] sm:$0xff] %v772_v28 }
 0x2c7   : > { %v727_v29 = vpop.f32.mrf.mxu1 }
 0x2c8   : > { %799 = vst [vmem:[%s1725_s5 + $0x60] sm:$0xff] %v727_v29 }
 0x2cd   : > { %v775_v30 = vpop.f32.mrf.mxu3 }
 0x2ce   : > { %815 = vst [vmem:[%s1725_s5 + $0xe0] sm:$0xff] %v775_v30 }
 0x2cf   : > { %v730_v31 = vpop.f32.mrf.mxu1 }
 0x2d0   : > { %800 = vst [vmem:[%s1725_s5 + $0x68] sm:$0xff] %v730_v31 }
 0x2d5   : > { %v778_v32 = vpop.f32.mrf.mxu3 }
 0x2d6   : > { %816 = vst [vmem:[%s1725_s5 + $0xe8] sm:$0xff] %v778_v32 }
 0x2d7   : > { %v733_v33 = vpop.f32.mrf.mxu1 }
 0x2d8   : > { %801 = vst [vmem:[%s1725_s5 + $0x70] sm:$0xff] %v733_v33 }
 0x2dd   : > { %v781_v34 = vpop.f32.mrf.mxu3 }
 0x2de   : > { %817 = vst [vmem:[%s1725_s5 + $0xf0] sm:$0xff] %v781_v34 }
 0x2df   : > { %v736_v35 = vpop.f32.mrf.mxu1 }
 0x2e0   : > { %802 = vst [vmem:[%s1725_s5 + $0x78] sm:$0xff] %v736_v35 }
 0x2e5   : > { %v784_v36 = vpop.f32.mrf.mxu3 }
 0x2e6   : > { %818 = vst [vmem:[%s1725_s5 + $0xf8] sm:$0xff] %v784_v36 }
 0x2e7   : > { %1281 = shalt.err (!%p1278_p9)
}
 0x2e8   : > { %s1396_s1 = smov 128   ;;  %s1397_s4 = smov 8  }
 0x2e9   : > { %1045 = dma.vmem_to_hbm [thread:$0]  (%p1540_p5), %s837_s27, 4096, %s839_s24, %s820_s23, %s1396_s1, %s1396_s1, %s1397_s4  }
 0x2ea PF: > { %s1859_s5 = sld [smem:[#allocation20_spill]] }
 0x2eb   : > { %s1860_s8 = sld [smem:[#allocation15_spill]] }
 0x2f0   : > { %p1062_p6 = scmp.ge.s32.totalorder %s1859_s5, 2 }
 0x2f1   : > { %s853_s26 = sand.u32 1, %s1860_s8  }
 0x2f2   : > { %p1058_p1 = pnand %p1062_p6, %p1548_p7  ;;  %s854_s6 = scalar_lea.sflag [#allocation6], %s853_s26 }
 0x2f4   : > { %p1059_p3 = pneg %p1058_p1 }
 0x2f6   : > { %1339 = dma.done.wait (%p1059_p3), %s854_s6, 4096  }
 0x2f7   : > { %1341 = vsyncadd (%p1059_p3), %s854_s6, 4294963200  ;;  %s22_s22 = sadd.s32 1, %s1859_s5   ;;  %s1862_s25 = sld [smem:[#allocation23_spill]] }
 0x2f8   : > { %p19_p10 = scmp.ge.s32.totalorder %s22_s22, 6   ;;  %s1863_s21 = sld [smem:[#allocation16_spill]] }
 0x2f9   : > { %s1864_s17 = sld [smem:[#allocation24_spill]]  ;;  %s1868_s12 = smov %s1348_s13 }
 0x2fa   : > { %s1865_s19 = sld [smem:[#allocation19_spill]]  ;;  %s1869_s13 = smov %s1352_s14 }
 0x2fb   : > { %s1866_s3 = sld [smem:[#allocation21_spill]]  ;;  %s1871_s15 = smov %s1360_s16 }
 0x2fc   : > { %s1867_s27 = sld [smem:[#allocation22_spill]]  ;;  %s1873_s18 = smov %s1376_s20 }
 0x2fd   : > { %s1870_s14 = smov %s1862_s25 }
 0x2fe   : > { %s1872_s16 = smov %s1863_s21  ;;  %21 = sbr.rel (!%p19_p10) target bundleno = 14 (0xe), region = 101 }
 0x301   : > { %s1874_s20 = smov %s1866_s3 }
 0x302   : > { %s1875_s21 = smov %s1867_s27 }
 0x303   :  { %860 = vsyncpa [#allocation5], 1 }
 0x304   :  { %862 = vsyncpa [#allocation5 + $0x1], 1 }
 0x305   :  { %863 = vsyncpa [#allocation8], 1 }
 0x306   :  { %865 = vsyncpa [#allocation8 + $0x1], 1 }
 0x307   :  { %866 = vsyncpa [#allocation6], 1 }
 0x308   :  { %868 = vsyncpa [#allocation6 + $0x1], 1 }

</bundles_post_ra>
